<compile_context>
chip_gen: v5e
topology: v5e:2x2
jax: 0.10.0
libtpu: 0.0.40
codegen_flags: <defaults>
</compile_context>

<pallas_src>
import jax
import jax.numpy as jnp
from jax.experimental import pallas as pl
from jax.experimental.pallas import tpu as pltpu

_LANE = 128


def _relu_kernel(x_ref, o_ref):
    # Elementwise ReLU on the current VMEM tile (pure VPU, HBM-bound).
    o_ref[...] = jnp.maximum(x_ref[...], jnp.zeros((), x_ref.dtype))


def relu_pallas(x: jax.Array) -> jax.Array:
    """Elementwise ReLU of an arbitrary-shaped array via a Pallas TPU kernel."""
    orig_shape = x.shape
    dtype = x.dtype
    itemsize = jnp.dtype(dtype).itemsize
    # Dtype-aware sublane granularity: 8 for 4-byte, 16 for 2-byte, 32 for 1-byte.
    sub = max(8, 32 // itemsize)

    flat = x.reshape(-1)
    n = flat.shape[0]

    # Lane-aligned bulk processed by the kernel; tiny tail (if any) handled
    # in the wrapper -- no pad / no trailing-slice HBM round-trips.
    n_bulk = (n // _LANE) * _LANE
    if n_bulk == 0:
        # Fewer than 128 elements: a kernel launch is pure overhead.
        return jnp.maximum(x, jnp.zeros((), dtype))

    bulk = flat if n_bulk == n else flat[:n_bulk]
    rows = n_bulk // _LANE
    x2d = bulk.reshape(rows, _LANE)
    bulk_bytes = rows * _LANE * itemsize

    # <= 512 KiB: single full-array block (block_shape == array dims, so the
    # (8,128) divisibility rule does not apply).  Launch-overhead dominated;
    # pipelining buys nothing at this size.
    single_block_bytes = 512 * 1024
    if bulk_bytes <= single_block_bytes:
        out2d = pl.pallas_call(
            _relu_kernel,
            out_shape=jax.ShapeDtypeStruct((rows, _LANE), dtype),
            input_output_aliases={0: 0},  # in-place, like nn.ReLU(inplace=True)
        )(x2d)
    else:
        # Tiled, software-pipelined path: ~2 MiB per block (85%+ of the HBM
        # roofline plateau), sublane-aligned row count, cdiv grid (Pallas
        # masks the partial last block's writes).  "parallel" lets the grid
        # shard across both TensorCores on v7x.
        target_block_bytes = 2 * 1024 * 1024
        tile_rows = (target_block_bytes // (_LANE * itemsize)) // sub * sub
        tile_rows = max(sub, min(tile_rows, (rows // sub) * sub or sub))
        grid = (pl.cdiv(rows, tile_rows),)
        out2d = pl.pallas_call(
            _relu_kernel,
            out_shape=jax.ShapeDtypeStruct((rows, _LANE), dtype),
            grid=grid,
            in_specs=[pl.BlockSpec((tile_rows, _LANE), lambda i: (i, 0))],
            out_specs=pl.BlockSpec((tile_rows, _LANE), lambda i: (i, 0)),
            input_output_aliases={0: 0},
            compiler_params=pltpu.CompilerParams(
                dimension_semantics=("parallel",),
                # Guardrail: 2 MiB * 2 bufs * (in+out) = 8 MiB resident; stay
                # well inside v7x's 64 MiB physical / v5e's 16 MiB scoped VMEM.
                vmem_limit_bytes=32 * 1024 * 1024,
            ),
        )(x2d)

    out_flat = out2d.reshape(-1)
    if n_bulk != n:
        tail = jnp.maximum(flat[n_bulk:], jnp.zeros((), dtype))
        out_flat = jnp.concatenate([out_flat, tail])
    return out_flat.reshape(orig_shape)


if __name__ == "__main__":
    key = jax.random.PRNGKey(0)
    # Same shape as the original module's input: NCHW (1, 1152, 7, 7).
    x = jax.random.normal(key, (1, 1152, 7, 7), dtype=jnp.float32)

    y = relu_pallas(x)
    jax.block_until_ready(y)

    # Correctness check against the trivial JAX reference.
    y_ref = jnp.maximum(x, 0.0)
    assert y.shape == x.shape and y.dtype == x.dtype
    assert bool(jnp.all(y == y_ref))

    print("KERNEL_OK")
</pallas_src>

<mosaic_0001>
module attributes {stable_mosaic.version = 11 : i64} {
  func.func @_relu_kernel(%arg0: memref<441x128xf32, #tpu.memory_space<vmem>>, %arg1: memref<441x128xf32, #tpu.memory_space<vmem>>) attributes {dimension_semantics = [], scalar_prefetch = 0 : i64, scratch_operands = 0 : i64, tpu.core_type = #tpu.core_type<tc>} {
    %c0 = arith.constant 0 : index
    %c0_0 = arith.constant 0 : index
    %0 = vector.load %arg0[%c0, %c0_0] : memref<441x128xf32, #tpu.memory_space<vmem>>, vector<441x128xf32>
    %cst = arith.constant 0.000000e+00 : f32
    %1 = vector.broadcast %cst : f32 to vector<441x128xf32>
    %2 = arith.maximumf %0, %1 : vector<441x128xf32>
    %c0_1 = arith.constant 0 : index
    %c0_2 = arith.constant 0 : index
    %3 = vector.load %arg1[%c0_1, %c0_2] : memref<441x128xf32, #tpu.memory_space<vmem>>, vector<441x128xf32>
    tpu.vector_store %arg1[%c0_1, %c0_2], %2 {strides = array<i32>} : memref<441x128xf32, #tpu.memory_space<vmem>>, vector<441x128xf32>,
    return
  }
}

</mosaic_0001>

<bundles_post_ra>
// kernel: tpu_custom_call.1
= control target key start
LH: loop header
LB: loop body
LE: loop exit
PB: predicated region body
PF: predicated region fallthrough
CT: control target
= control target key end

     0   :  { %6 = vsyncpa [#allocation3], 0  ;;  %s294_s0 = inlined_call_operand.hbm [shape: f32[441,128], index: 0, kind: input, shape index: {}, may-alias: {0,1}]   ;;  %s295_s1 = inlined_call_operand.hbm [shape: f32[441,128], index: 1, kind: output, shape index: {}, may-alias: {0,1}]  }
   0x1   :  { %7 = vsyncpa [#allocation4], 0  ;;  %s12_s8 = sshll.u32 %s294_s0, 4  ;;  %s268_s9 = smov [#allocation2]   ;;  %s13_s8 = int_to_ptr.hbm [resolvable:$true] %s12_s8 }
   0x2   :  { %s14_s10 = sshll.u32 %s268_s9, 4  ;;  %s269_s11 = smov 128   ;;  %s15_s10 = int_to_ptr.vmem [resolvable:$true] %s14_s10 }
   0x3   :  { %s270_s12 = smov 8  }
   0x4   :  { %20 = dma.hbm_to_vmem [thread:$0]  %s13_s8, 7168, %s15_s10, [#allocation3], %s269_s11, %s269_s11, %s270_s12  }
   0x5   :  { %264 = dma.done.wait [#allocation3], 7168  }
   0x6   :  { %265 = vsyncadd [#allocation3], 4294960128  ;;  %v25_v0 = vld [vmem:[#allocation2] sm:$0xff]  ;;  %v26_v1 = vld [vmem:[#allocation2 + $0x8] sm:$0xff]  ;;  %s271_s0 = smov [#allocation5]   ;;  %s199_s16 = sshll.u32 %s295_s1, 4  ;;  %s200_s16 = int_to_ptr.hbm [resolvable:$true] %s199_s16 }
   0x7   :  { %v27_v2 = vld [vmem:[#allocation2 + $0x10] sm:$0xff]  ;;  %v81_v3 = vmax.f32 %v25_v0, 0.0  ;;  %v82_v4 = vmax.f32 %v26_v1, 0.0  ;;  %v28_v6 = vld [vmem:[#allocation2 + $0x18] sm:$0xff]  ;;  %v29_v7 = vld [vmem:[#allocation2 + $0x20] sm:$0xff]  ;;  %s197_s13 = sshll.u32 %s271_s0, 4  ;;  %s198_s13 = int_to_ptr.vmem [resolvable:$true] %s197_s13 }
   0x8   :  { %v83_v5 = vmax.f32 %v27_v2, 0.0  ;;  %v30_v8 = vld [vmem:[#allocation2 + $0x28] sm:$0xff]  ;;  %v84_v9 = vmax.f32 %v28_v6, 0.0  ;;  %v31_v10 = vld [vmem:[#allocation2 + $0x30] sm:$0xff]  ;;  %v85_v11 = vmax.f32 %v29_v7, 0.0  ;;  %v32_v12 = vld [vmem:[#allocation2 + $0x38] sm:$0xff] }
   0x9   :  { %137 = vst [vmem:[#allocation5] sm:$0xff] %v81_v3  ;;  %v86_v13 = vmax.f32 %v30_v8, 0.0  ;;  %v33_v14 = vld [vmem:[#allocation2 + $0x40] sm:$0xff]  ;;  %v87_v15 = vmax.f32 %v31_v10, 0.0  ;;  %v34_v16 = vld [vmem:[#allocation2 + $0x48] sm:$0xff]  ;;  %v88_v17 = vmax.f32 %v32_v12, 0.0 }
   0xa   :  { %138 = vst [vmem:[#allocation5 + $0x8] sm:$0xff] %v82_v4  ;;  %v35_v18 = vld [vmem:[#allocation2 + $0x50] sm:$0xff]  ;;  %v89_v19 = vmax.f32 %v33_v14, 0.0  ;;  %v36_v20 = vld [vmem:[#allocation2 + $0x58] sm:$0xff]  ;;  %v90_v21 = vmax.f32 %v34_v16, 0.0  ;;  %v37_v22 = vld [vmem:[#allocation2 + $0x60] sm:$0xff] }
   0xb   :  { %139 = vst [vmem:[#allocation5 + $0x10] sm:$0xff] %v83_v5  ;;  %v91_v23 = vmax.f32 %v35_v18, 0.0  ;;  %v38_v24 = vld [vmem:[#allocation2 + $0x68] sm:$0xff]  ;;  %v92_v25 = vmax.f32 %v36_v20, 0.0  ;;  %v39_v26 = vld [vmem:[#allocation2 + $0x70] sm:$0xff]  ;;  %v93_v27 = vmax.f32 %v37_v22, 0.0 }
   0xc   :  { %140 = vst [vmem:[#allocation5 + $0x18] sm:$0xff] %v84_v9  ;;  %v40_v28 = vld [vmem:[#allocation2 + $0x78] sm:$0xff]  ;;  %v94_v29 = vmax.f32 %v38_v24, 0.0  ;;  %v41_v30 = vld [vmem:[#allocation2 + $0x80] sm:$0xff]  ;;  %v95_v31 = vmax.f32 %v39_v26, 0.0  ;;  %v42_v32 = vld [vmem:[#allocation2 + $0x88] sm:$0xff] }
   0xd   :  { %141 = vst [vmem:[#allocation5 + $0x20] sm:$0xff] %v85_v11  ;;  %v96_v33 = vmax.f32 %v40_v28, 0.0  ;;  %v43_v34 = vld [vmem:[#allocation2 + $0x90] sm:$0xff]  ;;  %v97_v35 = vmax.f32 %v41_v30, 0.0  ;;  %v44_v36 = vld [vmem:[#allocation2 + $0x98] sm:$0xff]  ;;  %v98_v37 = vmax.f32 %v42_v32, 0.0 }
   0xe   :  { %142 = vst [vmem:[#allocation5 + $0x28] sm:$0xff] %v86_v13  ;;  %v45_v38 = vld [vmem:[#allocation2 + $0xa0] sm:$0xff]  ;;  %v99_v39 = vmax.f32 %v43_v34, 0.0  ;;  %v46_v40 = vld [vmem:[#allocation2 + $0xa8] sm:$0xff]  ;;  %v100_v41 = vmax.f32 %v44_v36, 0.0  ;;  %v47_v42 = vld [vmem:[#allocation2 + $0xb0] sm:$0xff] }
   0xf   :  { %143 = vst [vmem:[#allocation5 + $0x30] sm:$0xff] %v87_v15  ;;  %v101_v43 = vmax.f32 %v45_v38, 0.0  ;;  %v48_v44 = vld [vmem:[#allocation2 + $0xb8] sm:$0xff]  ;;  %v102_v45 = vmax.f32 %v46_v40, 0.0  ;;  %v49_v46 = vld [vmem:[#allocation2 + $0xc0] sm:$0xff]  ;;  %v103_v47 = vmax.f32 %v47_v42, 0.0 }
  0x10   :  { %144 = vst [vmem:[#allocation5 + $0x38] sm:$0xff] %v88_v17  ;;  %v50_v48 = vld [vmem:[#allocation2 + $0xc8] sm:$0xff]  ;;  %v104_v49 = vmax.f32 %v48_v44, 0.0  ;;  %v51_v50 = vld [vmem:[#allocation2 + $0xd0] sm:$0xff]  ;;  %v105_v51 = vmax.f32 %v49_v46, 0.0  ;;  %v52_v52 = vld [vmem:[#allocation2 + $0xd8] sm:$0xff] }
  0x11   :  { %145 = vst [vmem:[#allocation5 + $0x40] sm:$0xff] %v89_v19  ;;  %v106_v53 = vmax.f32 %v50_v48, 0.0  ;;  %v53_v54 = vld [vmem:[#allocation2 + $0xe0] sm:$0xff]  ;;  %v107_v55 = vmax.f32 %v51_v50, 0.0  ;;  %v54_v56 = vld [vmem:[#allocation2 + $0xe8] sm:$0xff]  ;;  %v108_v57 = vmax.f32 %v52_v52, 0.0 }
  0x12   :  { %146 = vst [vmem:[#allocation5 + $0x48] sm:$0xff] %v90_v21  ;;  %v55_v58 = vld [vmem:[#allocation2 + $0xf0] sm:$0xff]  ;;  %v109_v59 = vmax.f32 %v53_v54, 0.0  ;;  %v56_v60 = vld [vmem:[#allocation2 + $0xf8] sm:$0xff]  ;;  %v110_v61 = vmax.f32 %v54_v56, 0.0  ;;  %v57_v62 = vld [vmem:[#allocation2 + $0x100] sm:$0xff] }
  0x13   :  { %147 = vst [vmem:[#allocation5 + $0x50] sm:$0xff] %v91_v23  ;;  %v111_v63 = vmax.f32 %v55_v58, 0.0  ;;  %v58_v0 = vld [vmem:[#allocation2 + $0x108] sm:$0xff]  ;;  %v112_v1 = vmax.f32 %v56_v60, 0.0  ;;  %v59_v2 = vld [vmem:[#allocation2 + $0x110] sm:$0xff]  ;;  %v113_v3 = vmax.f32 %v57_v62, 0.0 }
  0x14   :  { %148 = vst [vmem:[#allocation5 + $0x58] sm:$0xff] %v92_v25  ;;  %v60_v4 = vld [vmem:[#allocation2 + $0x118] sm:$0xff]  ;;  %v114_v5 = vmax.f32 %v58_v0, 0.0  ;;  %v61_v6 = vld [vmem:[#allocation2 + $0x120] sm:$0xff]  ;;  %v115_v7 = vmax.f32 %v59_v2, 0.0  ;;  %v62_v8 = vld [vmem:[#allocation2 + $0x128] sm:$0xff] }
  0x15   :  { %149 = vst [vmem:[#allocation5 + $0x60] sm:$0xff] %v93_v27  ;;  %v116_v9 = vmax.f32 %v60_v4, 0.0  ;;  %v63_v10 = vld [vmem:[#allocation2 + $0x130] sm:$0xff]  ;;  %v117_v11 = vmax.f32 %v61_v6, 0.0  ;;  %v64_v12 = vld [vmem:[#allocation2 + $0x138] sm:$0xff]  ;;  %v118_v13 = vmax.f32 %v62_v8, 0.0 }
  0x16   :  { %150 = vst [vmem:[#allocation5 + $0x68] sm:$0xff] %v94_v29  ;;  %v65_v14 = vld [vmem:[#allocation2 + $0x140] sm:$0xff]  ;;  %v119_v15 = vmax.f32 %v63_v10, 0.0  ;;  %v66_v16 = vld [vmem:[#allocation2 + $0x148] sm:$0xff]  ;;  %v120_v17 = vmax.f32 %v64_v12, 0.0  ;;  %v67_v18 = vld [vmem:[#allocation2 + $0x150] sm:$0xff] }
  0x17   :  { %151 = vst [vmem:[#allocation5 + $0x70] sm:$0xff] %v95_v31  ;;  %v121_v19 = vmax.f32 %v65_v14, 0.0  ;;  %v68_v20 = vld [vmem:[#allocation2 + $0x158] sm:$0xff]  ;;  %v122_v21 = vmax.f32 %v66_v16, 0.0  ;;  %v69_v22 = vld [vmem:[#allocation2 + $0x160] sm:$0xff]  ;;  %v123_v23 = vmax.f32 %v67_v18, 0.0 }
  0x18   :  { %152 = vst [vmem:[#allocation5 + $0x78] sm:$0xff] %v96_v33  ;;  %v70_v24 = vld [vmem:[#allocation2 + $0x168] sm:$0xff]  ;;  %v124_v25 = vmax.f32 %v68_v20, 0.0  ;;  %v71_v26 = vld [vmem:[#allocation2 + $0x170] sm:$0xff]  ;;  %v125_v27 = vmax.f32 %v69_v22, 0.0  ;;  %v72_v28 = vld [vmem:[#allocation2 + $0x178] sm:$0xff] }
  0x19   :  { %153 = vst [vmem:[#allocation5 + $0x80] sm:$0xff] %v97_v35  ;;  %v126_v29 = vmax.f32 %v70_v24, 0.0  ;;  %v73_v30 = vld [vmem:[#allocation2 + $0x180] sm:$0xff]  ;;  %v127_v31 = vmax.f32 %v71_v26, 0.0  ;;  %v74_v32 = vld [vmem:[#allocation2 + $0x188] sm:$0xff]  ;;  %v128_v33 = vmax.f32 %v72_v28, 0.0 }
  0x1a   :  { %154 = vst [vmem:[#allocation5 + $0x88] sm:$0xff] %v98_v37  ;;  %v75_v34 = vld [vmem:[#allocation2 + $0x190] sm:$0xff]  ;;  %v129_v35 = vmax.f32 %v73_v30, 0.0  ;;  %v76_v36 = vld [vmem:[#allocation2 + $0x198] sm:$0xff]  ;;  %v130_v37 = vmax.f32 %v74_v32, 0.0  ;;  %v77_v38 = vld [vmem:[#allocation2 + $0x1a0] sm:$0xff] }
  0x1b   :  { %155 = vst [vmem:[#allocation5 + $0x90] sm:$0xff] %v99_v39  ;;  %v131_v39 = vmax.f32 %v75_v34, 0.0  ;;  %v78_v40 = vld [vmem:[#allocation2 + $0x1a8] sm:$0xff]  ;;  %v79_v42 = vld [vmem:[#allocation2 + $0x1b0] sm:$0xff]  ;;  %v80_v44 = vld [vmem:[#allocation2 + $0x1b8] sm:$0x1] }
  0x1c   :  { %156 = vst [vmem:[#allocation5 + $0x98] sm:$0xff] %v100_v41  ;;  %v132_v41 = vmax.f32 %v76_v36, 0.0  ;;  %v135_v46 = vmax.f32 %v79_v42, 0.0 }
  0x1d   :  { %157 = vst [vmem:[#allocation5 + $0xa0] sm:$0xff] %v101_v43  ;;  %v133_v43 = vmax.f32 %v77_v38, 0.0 }
  0x1e   :  { %158 = vst [vmem:[#allocation5 + $0xa8] sm:$0xff] %v102_v45  ;;  %v134_v45 = vmax.f32 %v78_v40, 0.0 }
  0x1f   :  { %159 = vst [vmem:[#allocation5 + $0xb0] sm:$0xff] %v103_v47  ;;  %v136_v47 = vmax.f32 %v80_v44, 0.0 }
  0x20   :  { %160 = vst [vmem:[#allocation5 + $0xb8] sm:$0xff] %v104_v49 }
  0x21   :  { %161 = vst [vmem:[#allocation5 + $0xc0] sm:$0xff] %v105_v51 }
  0x22   :  { %162 = vst [vmem:[#allocation5 + $0xc8] sm:$0xff] %v106_v53 }
  0x23   :  { %163 = vst [vmem:[#allocation5 + $0xd0] sm:$0xff] %v107_v55 }
  0x24   :  { %164 = vst [vmem:[#allocation5 + $0xd8] sm:$0xff] %v108_v57 }
  0x25   :  { %165 = vst [vmem:[#allocation5 + $0xe0] sm:$0xff] %v109_v59 }
  0x26   :  { %166 = vst [vmem:[#allocation5 + $0xe8] sm:$0xff] %v110_v61 }
  0x27   :  { %167 = vst [vmem:[#allocation5 + $0xf0] sm:$0xff] %v111_v63 }
  0x28   :  { %168 = vst [vmem:[#allocation5 + $0xf8] sm:$0xff] %v112_v1 }
  0x29   :  { %169 = vst [vmem:[#allocation5 + $0x100] sm:$0xff] %v113_v3 }
  0x2a   :  { %170 = vst [vmem:[#allocation5 + $0x108] sm:$0xff] %v114_v5 }
  0x2b   :  { %171 = vst [vmem:[#allocation5 + $0x110] sm:$0xff] %v115_v7 }
  0x2c   :  { %172 = vst [vmem:[#allocation5 + $0x118] sm:$0xff] %v116_v9 }
  0x2d   :  { %173 = vst [vmem:[#allocation5 + $0x120] sm:$0xff] %v117_v11 }
  0x2e   :  { %174 = vst [vmem:[#allocation5 + $0x128] sm:$0xff] %v118_v13 }
  0x2f   :  { %175 = vst [vmem:[#allocation5 + $0x130] sm:$0xff] %v119_v15 }
  0x30   :  { %176 = vst [vmem:[#allocation5 + $0x138] sm:$0xff] %v120_v17 }
  0x31   :  { %177 = vst [vmem:[#allocation5 + $0x140] sm:$0xff] %v121_v19 }
  0x32   :  { %178 = vst [vmem:[#allocation5 + $0x148] sm:$0xff] %v122_v21 }
  0x33   :  { %179 = vst [vmem:[#allocation5 + $0x150] sm:$0xff] %v123_v23 }
  0x34   :  { %180 = vst [vmem:[#allocation5 + $0x158] sm:$0xff] %v124_v25 }
  0x35   :  { %181 = vst [vmem:[#allocation5 + $0x160] sm:$0xff] %v125_v27 }
  0x36   :  { %182 = vst [vmem:[#allocation5 + $0x168] sm:$0xff] %v126_v29 }
  0x37   :  { %183 = vst [vmem:[#allocation5 + $0x170] sm:$0xff] %v127_v31 }
  0x38   :  { %184 = vst [vmem:[#allocation5 + $0x178] sm:$0xff] %v128_v33 }
  0x39   :  { %185 = vst [vmem:[#allocation5 + $0x180] sm:$0xff] %v129_v35 }
  0x3a   :  { %186 = vst [vmem:[#allocation5 + $0x188] sm:$0xff] %v130_v37 }
  0x3b   :  { %187 = vst [vmem:[#allocation5 + $0x190] sm:$0xff] %v131_v39 }
  0x3c   :  { %188 = vst [vmem:[#allocation5 + $0x198] sm:$0xff] %v132_v41 }
  0x3d   :  { %189 = vst [vmem:[#allocation5 + $0x1a0] sm:$0xff] %v133_v43 }
  0x3e   :  { %190 = vst [vmem:[#allocation5 + $0x1a8] sm:$0xff] %v134_v45 }
  0x3f   :  { %191 = vst [vmem:[#allocation5 + $0x1b0] sm:$0xff] %v135_v46 }
  0x40   :  { %192 = vst [vmem:[#allocation5 + $0x1b8] sm:$0x1] %v136_v47 }
  0x41   :  { %205 = dma.vmem_to_hbm [thread:$0]  %s198_s13, 7168, %s200_s16, [#allocation4], %s269_s11, %s269_s11, %s270_s12  }
  0x42   :  { %266 = dma.done.wait [#allocation4], 7168  }
  0x43   :  { %267 = vsyncadd [#allocation4], 4294960128 }
  0x44   :  { %210 = vsyncpa [#allocation3], 1 }
  0x45   :  { %211 = vsyncpa [#allocation4], 1 }

</bundles_post_ra>
